<compile_context>
chip_gen: v7x
topology: tpu7x:2x2x1
jax: 0.10.0
libtpu: 0.0.40
codegen_flags: <defaults>
</compile_context>

<pallas_src>
import functools

import jax
import jax.numpy as jnp
import numpy as np
from jax.experimental import pallas as pl
from jax.experimental.pallas import tpu as pltpu

MODE = "LSTM"
NUM_GATE = 4                      # LSTM
LANE = 128
SUBLANE = 8
GATE_ORDER = (0, 1, 3, 2)         # pack as (i, f, o, g): sigmoids contiguous, tanh last


def _round_up(v, m):
    return (v + m - 1) // m * m


def _num_tensorcores():
    """Best-effort TensorCore count; default 1 (v5e/v6e)."""
    try:
        info = pltpu.get_tpu_info()
        for name in ("num_cores", "core_count", "num_tensorcores",
                     "tensorcore_count", "cores_per_chip"):
            v = getattr(info, name, None)
            if v:
                return int(v)
    except Exception:
        pass
    return 1


def _vmem_limit_bytes():
    """~85% of physical VMEM, capped at 100 MiB (=> ~54 MiB on v7x's 64 MiB)."""
    phys = 128 * 1024 * 1024
    try:
        v = getattr(pltpu.get_tpu_info(), "vmem_capacity_bytes", None)
        if v:
            phys = int(v)
    except Exception:
        pass
    return int(min(int(phys * 0.85), 100 * 1024 * 1024))


def _fit_t_chunk(t_chunk, b_block, hp, vmem_limit):
    """Halve t_chunk until W_hh + double-buffered gin/out blocks fit VMEM."""
    g = NUM_GATE * hp
    fixed = hp * g * 2 + 6 * b_block * hp * 4   # bf16 W_hh + f32 h0/c0/hT/cT/scratch
    while t_chunk > 8:
        blocks = 2 * t_chunk * b_block * g * 2 + 2 * t_chunk * b_block * hp * 2
        if fixed + blocks <= int(vmem_limit * 0.75):
            break
        t_chunk //= 2
    return max(t_chunk, 1)


def _pick_row_block(rows, sub_mult=16, target=2048):
    """Largest divisor of `rows` that is <= target and a multiple of sub_mult."""
    if rows <= target:
        return rows
    best = sub_mult
    d = 1
    while d * d <= rows:
        if rows % d == 0:
            for cand in (d, rows // d):
                if cand <= target and cand % sub_mult == 0:
                    best = max(best, cand)
        d += 1
    return best


def _pad_gate_weight_t(w, h, h_pad, in_dim, in_pad, dtype):
    """(num_gate*h, in_dim) -> per-gate zero-padded, (i,f,o,g)-ordered,
    transposed (in_pad, num_gate*h_pad)."""
    w4 = w.reshape(NUM_GATE, h, in_dim)[jnp.asarray(GATE_ORDER)]
    w4 = jnp.pad(w4, ((0, 0), (0, h_pad - h), (0, in_pad - in_dim)))
    return jnp.transpose(w4, (2, 0, 1)).reshape(in_pad, NUM_GATE * h_pad).astype(dtype)


def _pad_gate_bias(b_ih, b_hh, h, h_pad):
    b = (b_ih + b_hh).reshape(NUM_GATE, h)[jnp.asarray(GATE_ORDER)]
    b = jnp.pad(b, ((0, 0), (0, h_pad - h)))
    return b.reshape(1, NUM_GATE * h_pad).astype(jnp.float32)


# --------------------- hoisted input projection (parallel GEMM) --------------
def _input_proj_kernel(x_ref, w_ref, b_ref, o_ref):
    o_ref[...] = (
        jnp.dot(x_ref[...], w_ref[...], preferred_element_type=jnp.float32)
        + b_ref[...]
    ).astype(o_ref.dtype)


def _input_projection(x_pad, wih_t, bias, *, vmem_limit, out_dtype):
    """gates_in = x @ W_ih^T + (b_ih + b_hh) over all (Tp*Bp) rows at once."""
    Tp, Bp, in_pad = x_pad.shape
    G = wih_t.shape[1]
    rows = Tp * Bp
    x2d = x_pad.reshape(rows, in_pad)

    row_block = _pick_row_block(rows)              # VMEM-sized, not tied to t_chunk
    n_block = G                                    # column-block the gate axis so the
    while n_block > 2048 and n_block % 2 == 0 and (n_block // 2) % 128 == 0:
        n_block //= 2                              # weight need not be fully resident

    out = pl.pallas_call(
        _input_proj_kernel,
        out_shape=jax.ShapeDtypeStruct((rows, G), out_dtype),
        grid_spec=pltpu.PrefetchScalarGridSpec(
            num_scalar_prefetch=0,
            grid=(rows // row_block, G // n_block),
            in_specs=[
                pl.BlockSpec((row_block, in_pad), lambda r, n: (r, 0)),
                pl.BlockSpec((in_pad, n_block), lambda r, n: (0, n)),
                pl.BlockSpec((1, n_block), lambda r, n: (0, n)),
            ],
            out_specs=pl.BlockSpec((row_block, n_block), lambda r, n: (r, n)),
        ),
        compiler_params=pltpu.CompilerParams(
            dimension_semantics=("parallel", "arbitrary"),
            vmem_limit_bytes=int(vmem_limit)),
    )(x2d, wih_t, bias)
    return out.reshape(Tp, Bp, G)


# ----------------------------- recurrent kernel ------------------------------
def _lstm_recurrence_kernel(gin_ref, whh_ref, h0_ref, c0_ref,
                            out_ref, hT_ref, cT_ref, h_scr, c_scr,
                            *, t_chunk, rem_steps, hidden_pad):
    chunk = pl.program_id(1)
    last_chunk = pl.num_programs(1) - 1
    H = hidden_pad

    @pl.when(chunk == 0)
    def _():
        h_scr[...] = h0_ref[...].astype(jnp.float32)
        c_scr[...] = c0_ref[...].astype(jnp.float32)

    def step(t, carry):
        h, c = carry
        # Only the small (B, Hp) @ (Hp, 4Hp) bf16 matmul sits on the serial
        # path; x projection + bias were hoisted into gin (f32 accumulation).
        gates = gin_ref[t].astype(jnp.float32) + jnp.dot(
            h.astype(whh_ref.dtype), whh_ref[...],
            preferred_element_type=jnp.float32)
        sig = jax.nn.sigmoid(gates[:, : 3 * H])      # (i, f, o) in one slab
        g_g = jnp.tanh(gates[:, 3 * H:])             # g
        i_g = sig[:, :H]
        f_g = sig[:, H:2 * H]
        o_g = sig[:, 2 * H:3 * H]
        c_new = f_g * c + i_g * g_g
        h_new = o_g * jnp.tanh(c_new)
        out_ref[t] = h_new.astype(out_ref.dtype)     # VMEM store; HBM writeback
        return h_new, c_new                          # once per chunk

    def run_steps(n_steps, zero_tail):
        if zero_tail:
            # Ragged last chunk: make unwritten tail rows exactly zero so no
            # stale VMEM flows into the next layer's GEMM.
            out_ref[...] = jnp.zeros_like(out_ref)
        unroll = n_steps if n_steps <= 8 else 8
        h_fin, c_fin = jax.lax.fori_loop(
            0, n_steps, step, (h_scr[...], c_scr[...]), unroll=unroll)
        h_scr[...] = h_fin
        c_scr[...] = c_fin

    if rem_steps == t_chunk:
        run_steps(t_chunk, zero_tail=False)          # exact chunks: fully static
    else:
        @pl.when(chunk != last_chunk)
        def _():
            run_steps(t_chunk, zero_tail=False)

        @pl.when(chunk == last_chunk)
        def _():
            run_steps(rem_steps, zero_tail=True)     # static tail length

    @pl.when(chunk == last_chunk)
    def _():
        hT_ref[...] = h_scr[...].astype(hT_ref.dtype)
        cT_ref[...] = c_scr[...].astype(cT_ref.dtype)


def _lstm_recurrence(gin_pad, whh_t, h0_pad, c0_pad, *, seq_len, t_chunk,
                     b_block, vmem_limit):
    Tp, Bp, G = gin_pad.shape
    Hp = whh_t.shape[0]
    num_chunks = Tp // t_chunk
    num_bblk = Bp // b_block
    rem_steps = seq_len - (num_chunks - 1) * t_chunk   # steps in last chunk

    kernel = functools.partial(
        _lstm_recurrence_kernel,
        t_chunk=t_chunk, rem_steps=rem_steps, hidden_pad=Hp)

    out, hT, cT = pl.pallas_call(
        kernel,
        out_shape=(
            jax.ShapeDtypeStruct((Tp, Bp, Hp), gin_pad.dtype),   # bf16 layer output
            jax.ShapeDtypeStruct((Bp, Hp), jnp.float32),         # final h (f32)
            jax.ShapeDtypeStruct((Bp, Hp), jnp.float32),         # final c (f32)
        ),
        grid_spec=pltpu.PrefetchScalarGridSpec(
            num_scalar_prefetch=0,
            grid=(num_bblk, num_chunks),
            in_specs=[
                pl.BlockSpec((t_chunk, b_block, G), lambda b, c: (c, b, 0)),
                pl.BlockSpec((Hp, G), lambda b, c: (0, 0)),        # resident W_hh^T
                pl.BlockSpec((b_block, Hp), lambda b, c: (b, 0)),  # h0 (DMA once/b)
                pl.BlockSpec((b_block, Hp), lambda b, c: (b, 0)),  # c0 (DMA once/b)
            ],
            out_specs=[
                pl.BlockSpec((t_chunk, b_block, Hp), lambda b, c: (c, b, 0)),
                pl.BlockSpec((b_block, Hp), lambda b, c: (b, 0)),
                pl.BlockSpec((b_block, Hp), lambda b, c: (b, 0)),
            ],
            scratch_shapes=[
                pltpu.VMEM((b_block, Hp), jnp.float32),            # h carry (f32)
                pltpu.VMEM((b_block, Hp), jnp.float32),            # c carry (f32)
            ],
        ),
        compiler_params=pltpu.CompilerParams(
            dimension_semantics=("parallel", "arbitrary"),
            vmem_limit_bytes=int(vmem_limit)),
    )(gin_pad, whh_t, h0_pad, c0_pad)
    return out, hT, cT


# ------------------------------ module forward -------------------------------
def chiral_rnn_forward(x, params, hidden=None, *, t_chunk=None, b_block=None,
                       compute_dtype=jnp.bfloat16):
    """Mirrors ChiralRnnBase.forward for mode='LSTM'.

    x: (T, B, input_size), time-major (Recurrent() indexes input[i] over dim 0).
    params: per layer (w_ih, w_hh, b_ih, b_hh) big gate weights, gates (i,f,g,o)
    concatenated along dim 0 as in get_rnn_big_weight_bias_layer.
    Returns (output (T, B, H), next_hidden = [(h_T, c_T)] per layer).
    """
    T, B, input_size = x.shape
    H = params[0][1].shape[-1]
    num_layers = len(params)
    orig_dtype = x.dtype

    Hp = _round_up(H, LANE)
    # bf16 packs 16 rows per sublane tile -> round the batch to 16 so all
    # (b_block, *) bf16 blocks stay unmasked.
    b_mult = 16 if compute_dtype == jnp.bfloat16 else SUBLANE
    Bp = _round_up(B, b_mult)

    vmem_limit = _vmem_limit_bytes()
    cores = _num_tensorcores()

    if b_block is None:
        # Split the batch only when there really are 2 TensorCores (v7x).
        # On single-TC chips a split just re-streams W_hh twice per timestep.
        if cores >= 2 and Bp % (2 * b_mult) == 0:
            b_block = Bp // 2
        else:
            b_block = Bp

    if t_chunk is None:
        t_chunk = min(T, 128)
    t_chunk = min(_fit_t_chunk(t_chunk, b_block, Hp, vmem_limit), T)
    Tp = _round_up(T, t_chunk)

    if hidden is None:
        z = jnp.zeros((B, H), jnp.float32)
        hidden = [(z, z) for _ in range(num_layers)]

    # Pad once; every layer runs in the padded (Tp, Bp, Hp) space and the
    # result is sliced back at the very end.  Padded hidden lanes are inert
    # (zero weights/bias in padded lanes); padded batch/time rows are never
    # read by the recurrence and the ragged tail of each layer output is
    # explicitly zero-filled.
    in_pad0 = _round_up(input_size, LANE)
    cur = jnp.pad(x.astype(compute_dtype),
                  ((0, Tp - T), (0, Bp - B), (0, in_pad0 - input_size)))

    next_hidden = []
    for layer in range(num_layers):
        w_ih, w_hh, b_ih, b_hh = params[layer]
        in_dim = input_size if layer == 0 else H
        in_pad = in_pad0 if layer == 0 else Hp
        wih_t = _pad_gate_weight_t(w_ih, H, Hp, in_dim, in_pad, compute_dtype)
        whh_t = _pad_gate_weight_t(w_hh, H, Hp, H, Hp, compute_dtype)
        bias = _pad_gate_bias(b_ih, b_hh, H, Hp)                  # f32 (1, 4Hp)
        h0, c0 = hidden[layer]
        h0p = jnp.pad(h0.astype(jnp.float32), ((0, Bp - B), (0, Hp - H)))
        c0p = jnp.pad(c0.astype(jnp.float32), ((0, Bp - B), (0, Hp - H)))

        gates_in = _input_projection(cur, wih_t, bias,
                                     vmem_limit=vmem_limit,
                                     out_dtype=compute_dtype)
        cur, hTp, cTp = _lstm_recurrence(
            gates_in, whh_t, h0p, c0p,
            seq_len=T, t_chunk=t_chunk, b_block=b_block,
            vmem_limit=vmem_limit)
        next_hidden.append((hTp[:B, :H].astype(orig_dtype),
                            cTp[:B, :H].astype(orig_dtype)))

    return cur[:T, :B, :H].astype(orig_dtype), next_hidden


# ----------------------------- reference (plain JAX) -------------------------
def lstm_forward_ref(x, params, hidden=None):
    T, B, _ = x.shape
    H = params[0][1].shape[-1]
    num_layers = len(params)
    if hidden is None:
        z = jnp.zeros((B, H), x.dtype)
        hidden = [(z, z) for _ in range(num_layers)]

    next_hidden = []
    for layer in range(num_layers):
        w_ih, w_hh, b_ih, b_hh = params[layer]

        def cell(carry, x_t, w_ih=w_ih, w_hh=w_hh, b_ih=b_ih, b_hh=b_hh):
            h, c = carry
            gates = x_t @ w_ih.T + b_ih + h @ w_hh.T + b_hh
            i_g, f_g, g_g, o_g = jnp.split(gates, 4, axis=-1)
            i_g = jax.nn.sigmoid(i_g)
            f_g = jax.nn.sigmoid(f_g)
            g_g = jnp.tanh(g_g)
            o_g = jax.nn.sigmoid(o_g)
            c_new = f_g * c + i_g * g_g
            h_new = o_g * jnp.tanh(c_new)
            return (h_new, c_new), h_new

        (hT, cT), out = jax.lax.scan(cell, hidden[layer], x)
        next_hidden.append((hT, cT))
        x = out
    return x, next_hidden


# ----------------------------------- main ------------------------------------
def make_params(key, num_layers, input_size, hidden_size, dtype=jnp.float32):
    """Deterministic stand-in for get_rnn_big_weight_bias_layer per layer."""
    params = []
    for layer in range(num_layers):
        in_size = input_size if layer == 0 else hidden_size
        key, k1, k2, k3, k4 = jax.random.split(key, 5)
        scale = 1.0 / np.sqrt(hidden_size)
        w_ih = jax.random.uniform(k1, (NUM_GATE * hidden_size, in_size),
                                  dtype, -scale, scale)
        w_hh = jax.random.uniform(k2, (NUM_GATE * hidden_size, hidden_size),
                                  dtype, -scale, scale)
        b_ih = jax.random.uniform(k3, (NUM_GATE * hidden_size,), dtype,
                                  -scale, scale)
        b_hh = jax.random.uniform(k4, (NUM_GATE * hidden_size,), dtype,
                                  -scale, scale)
        params.append((w_ih, w_hh, b_ih, b_hh))
    return params


if __name__ == "__main__":
    T, B = 8, 4                 # seq len, batch
    INPUT_SIZE = 16
    HIDDEN_SIZE = 32
    NUM_LAYERS = 2

    key = jax.random.PRNGKey(0)
    kx, kp = jax.random.split(key)
    x = jax.random.normal(kx, (T, B, INPUT_SIZE), jnp.float32)
    params = make_params(kp, NUM_LAYERS, INPUT_SIZE, HIDDEN_SIZE)

    out, next_hidden = chiral_rnn_forward(x, params)
    out = jax.block_until_ready(out)
    next_hidden = jax.block_until_ready(next_hidden)

    # correctness check vs. plain-JAX f32 reference (bf16 MXU operands ->
    # loosened tolerance per the performance review)
    out_ref, nh_ref = lstm_forward_ref(x, params)
    np.testing.assert_allclose(np.asarray(out, np.float32),
                               np.asarray(out_ref, np.float32),
                               rtol=5e-2, atol=5e-2)
    for (h, c), (hr, cr) in zip(next_hidden, nh_ref):
        np.testing.assert_allclose(np.asarray(h, np.float32),
                                   np.asarray(hr, np.float32),
                                   rtol=5e-2, atol=5e-2)
        np.testing.assert_allclose(np.asarray(c, np.float32),
                                   np.asarray(cr, np.float32),
                                   rtol=5e-2, atol=5e-2)

    print("KERNEL_OK")
</pallas_src>

<mosaic_0001>
module attributes {stable_mosaic.version = 11 : i64} {
  func.func @_input_proj_kernel(%arg0: i32, %arg1: i32, %arg2: memref<128x128xbf16, #tpu.memory_space<vmem>>, %arg3: memref<128x512xbf16, #tpu.memory_space<vmem>>, %arg4: memref<1x512xf32, #tpu.memory_space<vmem>>, %arg5: memref<128x512xbf16, #tpu.memory_space<vmem>>) attributes {dimension_semantics = [#tpu.dimension_semantics<parallel>, #tpu.dimension_semantics<arbitrary>], iteration_bounds = array<i64: 1, 1>, scalar_prefetch = 0 : i64, scratch_operands = 0 : i64, tpu.core_type = #tpu.core_type<tc>, window_params = [{transform_indices = @transform_0, window_bounds = array<i64: 128, 128>}, {transform_indices = @transform_1, window_bounds = array<i64: 128, 512>}, {transform_indices = @transform_2, window_bounds = array<i64: 1, 512>}, {transform_indices = @transform_3, window_bounds = array<i64: 128, 512>}]} {
    %c0 = arith.constant 0 : index
    %c0_0 = arith.constant 0 : index
    %0 = vector.load %arg2[%c0, %c0_0] : memref<128x128xbf16, #tpu.memory_space<vmem>>, vector<128x128xbf16>
    %c0_1 = arith.constant 0 : index
    %c0_2 = arith.constant 0 : index
    %1 = vector.load %arg3[%c0_1, %c0_2] : memref<128x512xbf16, #tpu.memory_space<vmem>>, vector<128x512xbf16>
    %cst = arith.constant dense<0.000000e+00> : vector<128x512xf32>
    %2 = tpu.matmul %0, %1, %cst {dimension_numbers = #tpu.dot_dimension_numbers<[1], [0], [0], [1], [0, 0, 1, 1], [], []>} : vector<128x128xbf16>, vector<128x512xbf16>, vector<128x512xf32> -> vector<128x512xf32>
    %c0_3 = arith.constant 0 : index
    %c0_4 = arith.constant 0 : index
    %3 = vector.load %arg4[%c0_3, %c0_4] : memref<1x512xf32, #tpu.memory_space<vmem>>, vector<1x512xf32>
    %4 = vector.broadcast %3 : vector<1x512xf32> to vector<128x512xf32>
    %5 = arith.addf %2, %4 : vector<128x512xf32>
    %6 = arith.truncf %5 : vector<128x512xf32> to vector<128x512xbf16>
    %c0_5 = arith.constant 0 : index
    %c0_6 = arith.constant 0 : index
    %7 = vector.load %arg5[%c0_5, %c0_6] : memref<128x512xbf16, #tpu.memory_space<vmem>>, vector<128x512xbf16>
    tpu.vector_store %arg5[%c0_5, %c0_6], %6 {strides = array<i32>} : memref<128x512xbf16, #tpu.memory_space<vmem>>, vector<128x512xbf16>,
    return
  }
  func.func @transform_0(%arg0: i32, %arg1: i32) -> (i32, i32) {
    %c0_i32 = arith.constant 0 : i32
    %c0_i32_0 = arith.constant 0 : i32
    return %arg0, %c0_i32 : i32, i32
  }
  func.func @transform_1(%arg0: i32, %arg1: i32) -> (i32, i32) {
    %c0_i32 = arith.constant 0 : i32
    %c0_i32_0 = arith.constant 0 : i32
    return %c0_i32, %arg1 : i32, i32
  }
  func.func @transform_2(%arg0: i32, %arg1: i32) -> (i32, i32) {
    %c0_i32 = arith.constant 0 : i32
    %c0_i32_0 = arith.constant 0 : i32
    return %c0_i32, %arg1 : i32, i32
  }
  func.func @transform_3(%arg0: i32, %arg1: i32) -> (i32, i32) {
    %c0_i32 = arith.constant 0 : i32
    return %arg0, %arg1 : i32, i32
  }
}

</mosaic_0001>

<bundles_post_ra>
// kernel: tpu_custom_call.1
= control target key start
LH: loop header
LB: loop body
LE: loop exit
PB: predicated region body
PF: predicated region fallthrough
CT: control target
= control target key end

     0   :  { %8 = vsyncpa [#allocation3], 0  ;;  %s1235_s0 = inlined_call_operand.hbm [shape: bf16[128,128], index: 0, kind: input, shape index: {}]   ;;  %s1236_s1 = inlined_call_operand.hbm [shape: bf16[128,512], index: 1, kind: input, shape index: {}]   ;;  %s1237_s2 = inlined_call_operand.hbm [shape: f32[1,512], index: 2, kind: input, shape index: {}]   ;;  %s1238_s3 = inlined_call_operand.hbm [shape: bf16[128,512], index: 3, kind: output, shape index: {}]  }
   0x1   :  { %9 = vsyncpa [#allocation6], 0 }
   0x2   :  { %10 = vsyncpa [#allocation4], 0  ;;  %s1064_s12 = smov [#allocation5]   ;;  %s970_s16 = scalar_lea.hbm %s1236_s1, 4096 }
   0x3   :  { %s28_s13 = sshll.u32 %s1064_s12, 4  ;;  %p971_p0 = scmp.ne.s32.totalorder %s1236_s1, %s970_s16  ;;  %s29_s13 = int_to_ptr.vmem [resolvable:$true] %s28_s13 }
   0x4   :  { %p974_p1 = scmp.lt.u32.totalorder %s970_s16, %s1236_s1 }
   0x6   :  { %p976_p2 = pnand %p974_p1, %p971_p0 }
   0x8   :  { %979 = shalt.err (!%p976_p2)
}
   0x9   :  { %s980_s21 = scalar_lea.vmem %s29_s13, 4096  ;;  %p985_p4 = scmp.lt.s32.totalorder %s29_s13, %s29_s13 }
   0xa   :  { %p981_p3 = scmp.ne.s32.totalorder %s29_s13, %s980_s21  ;;  %p986_p5 = scmp.lt.s32.totalorder %s980_s21, %s980_s21 }
   0xc   :  { %p987_p6 = por %p986_p5, %p985_p4 }
   0xe   :  { %p988_p7 = pnand %p987_p6, %p981_p3 }
  0x10   :  { %991 = shalt.err (!%p988_p7)
}
  0x11   :  { %s1065_s22 = smov 256   ;;  %s1066_s23 = smov 16  }
  0x12   :  { %34 = dma.hbm_to_vmem [thread:$0]  %s1236_s1, 4096, %s29_s13, [#allocation6], %s1065_s22, %s1065_s22, %s1066_s23  }
  0x13   :  { %s1067_s26 = smov [#allocation2]   ;;  %s992_s30 = scalar_lea.hbm %s1235_s0, 1024 }
  0x14   :  { %s16_s27 = sshll.u32 %s1067_s26, 4  ;;  %p993_p8 = scmp.ne.s32.totalorder %s1235_s0, %s992_s30  ;;  %s17_s27 = int_to_ptr.vmem [resolvable:$true] %s16_s27 }
  0x15   :  { %p996_p9 = scmp.lt.u32.totalorder %s992_s30, %s1235_s0 }
  0x17   :  { %p998_p10 = pnand %p996_p9, %p993_p8 }
  0x19   :  { %1001 = shalt.err (!%p998_p10)
}
  0x1a   :  { %s1002_s8 = scalar_lea.vmem %s17_s27, 1024  ;;  %p1007_p12 = scmp.lt.s32.totalorder %s17_s27, %s17_s27 }
  0x1b   :  { %p1003_p11 = scmp.ne.s32.totalorder %s17_s27, %s1002_s8  ;;  %p1008_p13 = scmp.lt.s32.totalorder %s1002_s8, %s1002_s8 }
  0x1d   :  { %p1009_p0 = por %p1008_p13, %p1007_p12 }
  0x1f   :  { %p1010_p1 = pnand %p1009_p0, %p1003_p11 }
  0x21   :  { %1013 = shalt.err (!%p1010_p1)
}
  0x22   :  { %s1068_s1 = smov 64   ;;  %s1069_s9 = smov 4  }
  0x23   :  { %22 = dma.hbm_to_vmem [thread:$0]  %s1235_s0, 1024, %s17_s27, [#allocation3], %s1068_s1, %s1068_s1, %s1069_s9  }
  0x24   :  { %s1070_s12 = smov [#allocation7]   ;;  %s1014_s16 = scalar_lea.hbm %s1237_s2, 64 }
  0x25   :  { %s41_s13 = sshll.u32 %s1070_s12, 4  ;;  %p1015_p2 = scmp.ne.s32.totalorder %s1237_s2, %s1014_s16  ;;  %s42_s13 = int_to_ptr.vmem [resolvable:$true] %s41_s13 }
  0x26   :  { %p1018_p3 = scmp.lt.u32.totalorder %s1014_s16, %s1237_s2 }
  0x28   :  { %p1020_p4 = pnand %p1018_p3, %p1015_p2 }
  0x2a   :  { %1023 = shalt.err (!%p1020_p4)
}
  0x2b   :  { %s1024_s21 = scalar_lea.vmem %s42_s13, 64  ;;  %p1029_p6 = scmp.lt.s32.totalorder %s42_s13, %s42_s13 }
  0x2c   :  { %p1025_p5 = scmp.ne.s32.totalorder %s42_s13, %s1024_s21  ;;  %p1030_p7 = scmp.lt.s32.totalorder %s1024_s21, %s1024_s21 }
  0x2e   :  { %p1031_p8 = por %p1030_p7, %p1029_p6 }
  0x30   :  { %p1032_p9 = pnand %p1031_p8, %p1025_p5 }
  0x32   :  { %1035 = shalt.err (!%p1032_p9)
}
  0x33   :  { %44 = dma.hbm_to_vmem [thread:$0]  %s1237_s2, 64, %s42_s13, [#allocation6]  }
  0x34   :  { %1058 = dma.done.wait [#allocation3], 1024  }
  0x35   :  { %1059 = vsyncadd [#allocation3], 4294966272 }
  0x36   :  { %1060 = dma.done.wait [#allocation6], 4160  }
  0x37   :  { %1061 = vsyncadd [#allocation6], 4294963136  ;;  %v1071_v0 = vmov 0   ;;  %v914_v1 = vld [vmem:[#allocation5 + $0x4] ss:$16 sps:$4 sm:$0xff]   ;;  %v963_v34 = vld [vmem:[#allocation2 + $0x8] sm:$0xff]   ;;  %v105_v41 = vlaneseq }
  0x38   :  { %365 = vmatprep.mubr.bf16.mxu0 %v1071_v0  ;;  %478 = vmatprep.mubr.bf16.mxu1 %v1071_v0  ;;  %v916_v2 = vld [vmem:[#allocation5 + $0xc] ss:$16 sps:$4 sm:$0xff]   ;;  %v918_v3 = vld [vmem:[#allocation5] ss:$16 sps:$4 sm:$0xff]   ;;  %v919_v4 = vld [vmem:[#allocation5 + $0x8] ss:$16 sps:$4 sm:$0xff]  }
  0x39   :  { %333 = vmatprep.subr.bf16.mxu0 %v914_v1  ;;  %446 = vmatprep.subr.bf16.mxu1 %v916_v2  ;;  %v920_v5 = vld [vmem:[#allocation5 + $0x24] ss:$16 sps:$4 sm:$0xff]   ;;  %v922_v6 = vld [vmem:[#allocation5 + $0x2c] ss:$16 sps:$4 sm:$0xff]   ;;  %v924_v7 = vld [vmem:[#allocation5 + $0x20] ss:$16 sps:$4 sm:$0xff]  }
  0x3a   :  { %334 = vmatpush1.bf16.msra.mxu0 %v918_v3  ;;  %447 = vmatpush1.bf16.msra.mxu1 %v919_v4  ;;  %v925_v8 = vld [vmem:[#allocation5 + $0x28] ss:$16 sps:$4 sm:$0xff]   ;;  %v926_v9 = vld [vmem:[#allocation5 + $0x44] ss:$16 sps:$4 sm:$0xff]   ;;  %v928_v10 = vld [vmem:[#allocation5 + $0x4c] ss:$16 sps:$4 sm:$0xff]  }
  0x3b   :  { %335 = vmatprep.subr.bf16.mxu0 %v920_v5  ;;  %448 = vmatprep.subr.bf16.mxu1 %v922_v6  ;;  %v930_v11 = vld [vmem:[#allocation5 + $0x40] ss:$16 sps:$4 sm:$0xff]   ;;  %v931_v12 = vld [vmem:[#allocation5 + $0x48] ss:$16 sps:$4 sm:$0xff]   ;;  %v932_v13 = vld [vmem:[#allocation5 + $0x64] ss:$16 sps:$4 sm:$0xff]  }
  0x3c   :  { %v934_v14 = vld [vmem:[#allocation5 + $0x6c] ss:$16 sps:$4 sm:$0xff]   ;;  %v936_v15 = vld [vmem:[#allocation5 + $0x60] ss:$16 sps:$4 sm:$0xff]   ;;  %v937_v16 = vld [vmem:[#allocation5 + $0x68] ss:$16 sps:$4 sm:$0xff]  }
  0x3d   :  { %v938_v17 = vld [vmem:[#allocation5 + $0x84] ss:$16 sps:$4 sm:$0xff]   ;;  %v940_v18 = vld [vmem:[#allocation5 + $0x8c] ss:$16 sps:$4 sm:$0xff]   ;;  %v942_v19 = vld [vmem:[#allocation5 + $0x80] ss:$16 sps:$4 sm:$0xff]  }
  0x3e   :  { %336 = vmatpush1.bf16.msra.mxu0 %v924_v7  ;;  %449 = vmatpush1.bf16.msra.mxu1 %v925_v8  ;;  %v943_v20 = vld [vmem:[#allocation5 + $0x88] ss:$16 sps:$4 sm:$0xff]   ;;  %v944_v21 = vld [vmem:[#allocation5 + $0xa4] ss:$16 sps:$4 sm:$0xff]   ;;  %v946_v22 = vld [vmem:[#allocation5 + $0xac] ss:$16 sps:$4 sm:$0xff]  }
  0x3f   :  { %337 = vmatprep.subr.bf16.mxu0 %v926_v9  ;;  %450 = vmatprep.subr.bf16.mxu1 %v928_v10  ;;  %v948_v23 = vld [vmem:[#allocation5 + $0xa0] ss:$16 sps:$4 sm:$0xff]   ;;  %v949_v24 = vld [vmem:[#allocation5 + $0xa8] ss:$16 sps:$4 sm:$0xff]   ;;  %v950_v25 = vld [vmem:[#allocation5 + $0xc4] ss:$16 sps:$4 sm:$0xff]  }
  0x40   :  { %v952_v26 = vld [vmem:[#allocation5 + $0xcc] ss:$16 sps:$4 sm:$0xff]   ;;  %v954_v27 = vld [vmem:[#allocation5 + $0xc0] ss:$16 sps:$4 sm:$0xff]   ;;  %v955_v28 = vld [vmem:[#allocation5 + $0xc8] ss:$16 sps:$4 sm:$0xff]  }
  0x41   :  { %v956_v29 = vld [vmem:[#allocation5 + $0xe4] ss:$16 sps:$4 sm:$0xff]   ;;  %v958_v30 = vld [vmem:[#allocation5 + $0xec] ss:$16 sps:$4 sm:$0xff]   ;;  %v960_v31 = vld [vmem:[#allocation5 + $0xe0] ss:$16 sps:$4 sm:$0xff]  }
  0x42   :  { %338 = vmatpush1.bf16.msra.mxu0 %v930_v11  ;;  %451 = vmatpush1.bf16.msra.mxu1 %v931_v12  ;;  %v961_v32 = vld [vmem:[#allocation5 + $0xe8] ss:$16 sps:$4 sm:$0xff]   ;;  %v962_v33 = vld [vmem:[#allocation2] sm:$0xff]   ;;  %v964_v35 = vld [vmem:[#allocation2 + $0x10] sm:$0xff]   ;;  %v106_v42 = vshrl.u32 %v105_v41, 7  ;;  %s1072_s2 = smov [#allocation8]  }
  0x43   :  { %339 = vmatprep.subr.bf16.mxu0 %v932_v13  ;;  %452 = vmatprep.subr.bf16.mxu1 %v934_v14  ;;  %v965_v36 = vld [vmem:[#allocation2 + $0x18] sm:$0xff]   ;;  %v966_v37 = vld [vmem:[#allocation2 + $0x20] sm:$0xff]   ;;  %v967_v38 = vld [vmem:[#allocation2 + $0x28] sm:$0xff]   ;;  %s788_s25 = sshll.u32 %s1072_s2, 4  ;;  %s789_s25 = int_to_ptr.vmem [resolvable:$true] %s788_s25 }
  0x44   :  { %v968_v39 = vld [vmem:[#allocation2 + $0x30] sm:$0xff]   ;;  %v969_v40 = vld [vmem:[#allocation2 + $0x38] sm:$0xff]   ;;  %v107_v43 = vsub.s32 0, %v106_v42  ;;  %v115_v44 = vsub.s32 2, %v106_v42  ;;  %v103_v45 = vld [vmem:[#allocation7] sm:$0xf]  ;;  %p1041_p11 = scmp.lt.s32.totalorder %s789_s25, %s789_s25 }
  0x45   :  { %v111_v46 = vsub.s32 1, %v106_v42  ;;  %v119_v47 = vsub.s32 3, %v106_v42  ;;  %s1036_s26 = scalar_lea.vmem %s789_s25, 4096 }
  0x46   :  { %340 = vmatpush1.bf16.msra.mxu0 %v936_v15  ;;  %453 = vmatpush1.bf16.msra.mxu1 %v937_v16  ;;  %v1148_v48 = vrot.slane %v103_v45, %v107_v43  ;;  %v1150_v49 = vrot.slane %v103_v45, %v115_v44  ;;  %p1037_p10 = scmp.ne.s32.totalorder %s789_s25, %s1036_s26  ;;  %p1042_p12 = scmp.lt.s32.totalorder %s1036_s26, %s1036_s26 }
  0x47   :  { %341 = vmatprep.subr.bf16.mxu0 %v938_v17  ;;  %454 = vmatprep.subr.bf16.mxu1 %v940_v18  ;;  %v1152_v50 = vrot.slane %v103_v45, %v111_v46  ;;  %v1154_v51 = vrot.slane %v103_v45, %v119_v47 }
  0x48   :  { %p1043_p13 = por %p1042_p12, %p1041_p11 }
  0x4a   :  { %342 = vmatpush1.bf16.msra.mxu0 %v942_v19  ;;  %455 = vmatpush1.bf16.msra.mxu1 %v943_v20  ;;  %p1044_p0 = pnand %p1043_p13, %p1037_p10 }
  0x4b   :  { %343 = vmatprep.subr.bf16.mxu0 %v944_v21  ;;  %456 = vmatprep.subr.bf16.mxu1 %v946_v22 }
  0x4e   :  { %344 = vmatpush1.bf16.msra.mxu0 %v948_v23  ;;  %457 = vmatpush1.bf16.msra.mxu1 %v949_v24 }
  0x4f   :  { %345 = vmatprep.subr.bf16.mxu0 %v950_v25  ;;  %458 = vmatprep.subr.bf16.mxu1 %v952_v26 }
  0x52   :  { %346 = vmatpush1.bf16.msra.mxu0 %v954_v27  ;;  %459 = vmatpush1.bf16.msra.mxu1 %v955_v28 }
  0x53   :  { %347 = vmatprep.subr.bf16.mxu0 %v956_v29  ;;  %460 = vmatprep.subr.bf16.mxu1 %v958_v30 }
  0x56   :  { %348 = vmatpush1.bf16.msra.mxu0 %v960_v31  ;;  %461 = vmatpush1.bf16.msra.mxu1 %v961_v32 }
  0x59   :  { %366 = vmatmul.mubr.bf16.vlgmr.msra.gmra.mrb[0].mxu0 %v962_v33  ;;  %479 = vmatmul.mubr.bf16.vlgmr.msra.gmra.mrb[0].mxu1 %v962_v33 }
  0x5a   :  { %375 = vmatprep.mubr.bf16.mxu0 %v1071_v0  ;;  %488 = vmatprep.mubr.bf16.mxu1 %v1071_v0 }
  0x61   :  { %376 = vmatmul.mubr.bf16.gmra.mrb[4].mxu0 %v963_v34  ;;  %489 = vmatmul.mubr.bf16.gmra.mrb[4].mxu1 %v963_v34 }
  0x62   :  { %385 = vmatprep.mubr.bf16.mxu0 %v1071_v0  ;;  %498 = vmatprep.mubr.bf16.mxu1 %v1071_v0 }
  0x69   :  { %386 = vmatmul.mubr.bf16.gmra.mrb[8].mxu0 %v964_v35  ;;  %499 = vmatmul.mubr.bf16.gmra.mrb[8].mxu1 %v964_v35 }
  0x6a   :  { %395 = vmatprep.mubr.bf16.mxu0 %v1071_v0  ;;  %508 = vmatprep.mubr.bf16.mxu1 %v1071_v0 }
  0x71   :  { %396 = vmatmul.mubr.bf16.gmra.mrb[12].mxu0 %v965_v36  ;;  %509 = vmatmul.mubr.bf16.gmra.mrb[12].mxu1 %v965_v36 }
  0x72   :  { %405 = vmatprep.mubr.bf16.mxu0 %v1071_v0  ;;  %518 = vmatprep.mubr.bf16.mxu1 %v1071_v0 }
  0x79   :  { %406 = vmatmul.mubr.bf16.gmra.mrb[16].mxu0 %v966_v37  ;;  %519 = vmatmul.mubr.bf16.gmra.mrb[16].mxu1 %v966_v37 }
  0x7a   :  { %415 = vmatprep.mubr.bf16.mxu0 %v1071_v0  ;;  %528 = vmatprep.mubr.bf16.mxu1 %v1071_v0 }
  0x81   :  { %416 = vmatmul.mubr.bf16.gmra.mrb[20].mxu0 %v967_v38  ;;  %529 = vmatmul.mubr.bf16.gmra.mrb[20].mxu1 %v967_v38 }
  0x82   :  { %425 = vmatprep.mubr.bf16.mxu0 %v1071_v0  ;;  %538 = vmatprep.mubr.bf16.mxu1 %v1071_v0 }
  0x89   :  { %426 = vmatmul.mubr.bf16.gmra.mrb[24].mxu0 %v968_v39  ;;  %539 = vmatmul.mubr.bf16.gmra.mrb[24].mxu1 %v968_v39 }
  0x8a   :  { %435 = vmatprep.mubr.bf16.mxu0 %v1071_v0  ;;  %548 = vmatprep.mubr.bf16.mxu1 %v1071_v0 }
  0x91   :  { %436 = vmatmul.mubr.bf16.gmra.mrb[28].mxu0 %v969_v40  ;;  %549 = vmatmul.mubr.bf16.gmra.mrb[28].mxu1 %v969_v40 }
 0x12c   :  { %v367_v52 = vpop.f32.mrb[0].mxu0  ;;  %v480_v53 = vpop.f32.mrb[0].mxu1 }
 0x12d   :  { %v368_v54 = vadd.f32 %v367_v52, %v1148_v48  ;;  %v481_v55 = vadd.f32 %v480_v53, %v1150_v49  ;;  %v369_v56 = vpop.f32.mrb[1].mxu0  ;;  %v482_v57 = vpop.f32.mrb[1].mxu1 }
 0x12e   :  { %v370_v58 = vadd.f32 %v369_v56, %v1152_v50  ;;  %v483_v59 = vadd.f32 %v482_v57, %v1154_v51  ;;  %v371_v60 = vpop.f32.mrb[2].mxu0  ;;  %v484_v61 = vpop.f32.mrb[2].mxu1 }
 0x12f   :  { %v372_v62 = vadd.f32 %v371_v60, %v1148_v48  ;;  %v485_v63 = vadd.f32 %v484_v61, %v1150_v49  ;;  %v373_v0 = vpop.f32.mrb[3].mxu0  ;;  %v486_v1 = vpop.f32.mrb[3].mxu1 }
 0x130   :  { %v873_v2 = vpack.c.bf16 %v370_v58, %v368_v54  ;;  %v874_v3 = vpack.c.bf16 %v483_v59, %v481_v55  ;;  %v374_v4 = vadd.f32 %v373_v0, %v1152_v50  ;;  %v487_v5 = vadd.f32 %v486_v1, %v1154_v51 }
 0x132   :  { %751 = vst [vmem:[#allocation8] sm:$0xff] %v873_v2  ;;  %752 = vst [vmem:[#allocation8 + $0x8] sm:$0xff] %v874_v3  ;;  %v875_v6 = vpack.c.bf16 %v374_v4, %v372_v62  ;;  %v876_v7 = vpack.c.bf16 %v487_v5, %v485_v63 }
 0x134   :  { %753 = vst [vmem:[#allocation8 + $0x10] sm:$0xff] %v875_v6  ;;  %754 = vst [vmem:[#allocation8 + $0x18] sm:$0xff] %v876_v7  ;;  %v377_v8 = vpop.f32.mrb[4].mxu0  ;;  %v490_v9 = vpop.f32.mrb[4].mxu1 }
 0x135   :  { %v378_v10 = vadd.f32 %v377_v8, %v1148_v48  ;;  %v491_v11 = vadd.f32 %v490_v9, %v1150_v49  ;;  %v379_v12 = vpop.f32.mrb[5].mxu0  ;;  %v492_v13 = vpop.f32.mrb[5].mxu1 }
 0x136   :  { %v380_v14 = vadd.f32 %v379_v12, %v1152_v50  ;;  %v493_v15 = vadd.f32 %v492_v13, %v1154_v51  ;;  %v381_v16 = vpop.f32.mrb[6].mxu0  ;;  %v494_v17 = vpop.f32.mrb[6].mxu1 }
 0x137   :  { %v382_v18 = vadd.f32 %v381_v16, %v1148_v48  ;;  %v495_v19 = vadd.f32 %v494_v17, %v1150_v49  ;;  %v383_v20 = vpop.f32.mrb[7].mxu0  ;;  %v496_v21 = vpop.f32.mrb[7].mxu1 }
 0x138   :  { %v877_v22 = vpack.c.bf16 %v380_v14, %v378_v10  ;;  %v878_v23 = vpack.c.bf16 %v493_v15, %v491_v11  ;;  %v384_v24 = vadd.f32 %v383_v20, %v1152_v50  ;;  %v497_v25 = vadd.f32 %v496_v21, %v1154_v51 }
 0x13a   :  { %755 = vst [vmem:[#allocation8 + $0x20] sm:$0xff] %v877_v22  ;;  %756 = vst [vmem:[#allocation8 + $0x28] sm:$0xff] %v878_v23  ;;  %v879_v26 = vpack.c.bf16 %v384_v24, %v382_v18  ;;  %v880_v27 = vpack.c.bf16 %v497_v25, %v495_v19 }
 0x13c   :  { %757 = vst [vmem:[#allocation8 + $0x30] sm:$0xff] %v879_v26  ;;  %758 = vst [vmem:[#allocation8 + $0x38] sm:$0xff] %v880_v27  ;;  %v387_v28 = vpop.f32.mrb[8].mxu0  ;;  %v500_v29 = vpop.f32.mrb[8].mxu1 }
 0x13d   :  { %v388_v30 = vadd.f32 %v387_v28, %v1148_v48  ;;  %v501_v31 = vadd.f32 %v500_v29, %v1150_v49  ;;  %v389_v32 = vpop.f32.mrb[9].mxu0  ;;  %v502_v33 = vpop.f32.mrb[9].mxu1 }
 0x13e   :  { %v390_v34 = vadd.f32 %v389_v32, %v1152_v50  ;;  %v503_v35 = vadd.f32 %v502_v33, %v1154_v51  ;;  %v391_v36 = vpop.f32.mrb[10].mxu0  ;;  %v504_v37 = vpop.f32.mrb[10].mxu1 }
 0x13f   :  { %v392_v38 = vadd.f32 %v391_v36, %v1148_v48  ;;  %v505_v39 = vadd.f32 %v504_v37, %v1150_v49  ;;  %v393_v40 = vpop.f32.mrb[11].mxu0  ;;  %v506_v41 = vpop.f32.mrb[11].mxu1 }
 0x140   :  { %v881_v42 = vpack.c.bf16 %v390_v34, %v388_v30  ;;  %v882_v43 = vpack.c.bf16 %v503_v35, %v501_v31  ;;  %v394_v44 = vadd.f32 %v393_v40, %v1152_v50  ;;  %v507_v45 = vadd.f32 %v506_v41, %v1154_v51 }
 0x142   :  { %759 = vst [vmem:[#allocation8 + $0x40] sm:$0xff] %v881_v42  ;;  %760 = vst [vmem:[#allocation8 + $0x48] sm:$0xff] %v882_v43  ;;  %v883_v46 = vpack.c.bf16 %v394_v44, %v392_v38  ;;  %v884_v47 = vpack.c.bf16 %v507_v45, %v505_v39 }
 0x144   :  { %761 = vst [vmem:[#allocation8 + $0x50] sm:$0xff] %v883_v46  ;;  %762 = vst [vmem:[#allocation8 + $0x58] sm:$0xff] %v884_v47  ;;  %v397_v52 = vpop.f32.mrb[12].mxu0  ;;  %v510_v53 = vpop.f32.mrb[12].mxu1 }
 0x145   :  { %v398_v54 = vadd.f32 %v397_v52, %v1148_v48  ;;  %v511_v55 = vadd.f32 %v510_v53, %v1150_v49  ;;  %v399_v56 = vpop.f32.mrb[13].mxu0  ;;  %v512_v57 = vpop.f32.mrb[13].mxu1 }
 0x146   :  { %v400_v58 = vadd.f32 %v399_v56, %v1152_v50  ;;  %v513_v59 = vadd.f32 %v512_v57, %v1154_v51  ;;  %v401_v60 = vpop.f32.mrb[14].mxu0  ;;  %v514_v61 = vpop.f32.mrb[14].mxu1 }
 0x147   :  { %v402_v62 = vadd.f32 %v401_v60, %v1148_v48  ;;  %v515_v63 = vadd.f32 %v514_v61, %v1150_v49  ;;  %v403_v0 = vpop.f32.mrb[15].mxu0  ;;  %v516_v1 = vpop.f32.mrb[15].mxu1 }
 0x148   :  { %v885_v2 = vpack.c.bf16 %v400_v58, %v398_v54  ;;  %v886_v3 = vpack.c.bf16 %v513_v59, %v511_v55  ;;  %v404_v4 = vadd.f32 %v403_v0, %v1152_v50  ;;  %v517_v5 = vadd.f32 %v516_v1, %v1154_v51 }
 0x14a   :  { %763 = vst [vmem:[#allocation8 + $0x60] sm:$0xff] %v885_v2  ;;  %764 = vst [vmem:[#allocation8 + $0x68] sm:$0xff] %v886_v3  ;;  %v887_v6 = vpack.c.bf16 %v404_v4, %v402_v62  ;;  %v888_v7 = vpack.c.bf16 %v517_v5, %v515_v63 }
 0x14c   :  { %765 = vst [vmem:[#allocation8 + $0x70] sm:$0xff] %v887_v6  ;;  %766 = vst [vmem:[#allocation8 + $0x78] sm:$0xff] %v888_v7  ;;  %v407_v8 = vpop.f32.mrb[16].mxu0  ;;  %v520_v9 = vpop.f32.mrb[16].mxu1 }
 0x14d   :  { %v408_v10 = vadd.f32 %v407_v8, %v1148_v48  ;;  %v521_v11 = vadd.f32 %v520_v9, %v1150_v49  ;;  %v409_v12 = vpop.f32.mrb[17].mxu0  ;;  %v522_v13 = vpop.f32.mrb[17].mxu1 }
 0x14e   :  { %v410_v14 = vadd.f32 %v409_v12, %v1152_v50  ;;  %v523_v15 = vadd.f32 %v522_v13, %v1154_v51  ;;  %v411_v16 = vpop.f32.mrb[18].mxu0  ;;  %v524_v17 = vpop.f32.mrb[18].mxu1 }
 0x14f   :  { %v412_v18 = vadd.f32 %v411_v16, %v1148_v48  ;;  %v525_v19 = vadd.f32 %v524_v17, %v1150_v49  ;;  %v413_v20 = vpop.f32.mrb[19].mxu0  ;;  %v526_v21 = vpop.f32.mrb[19].mxu1 }
 0x150   :  { %v889_v22 = vpack.c.bf16 %v410_v14, %v408_v10  ;;  %v890_v23 = vpack.c.bf16 %v523_v15, %v521_v11  ;;  %v414_v24 = vadd.f32 %v413_v20, %v1152_v50  ;;  %v527_v25 = vadd.f32 %v526_v21, %v1154_v51 }
 0x152   :  { %767 = vst [vmem:[#allocation8 + $0x80] sm:$0xff] %v889_v22  ;;  %768 = vst [vmem:[#allocation8 + $0x88] sm:$0xff] %v890_v23  ;;  %v891_v26 = vpack.c.bf16 %v414_v24, %v412_v18  ;;  %v892_v27 = vpack.c.bf16 %v527_v25, %v525_v19 }
 0x154   :  { %769 = vst [vmem:[#allocation8 + $0x90] sm:$0xff] %v891_v26  ;;  %770 = vst [vmem:[#allocation8 + $0x98] sm:$0xff] %v892_v27  ;;  %v417_v28 = vpop.f32.mrb[20].mxu0  ;;  %v530_v29 = vpop.f32.mrb[20].mxu1 }
 0x155   :  { %v418_v30 = vadd.f32 %v417_v28, %v1148_v48  ;;  %v531_v31 = vadd.f32 %v530_v29, %v1150_v49  ;;  %v419_v32 = vpop.f32.mrb[21].mxu0  ;;  %v532_v33 = vpop.f32.mrb[21].mxu1 }
 0x156   :  { %v420_v34 = vadd.f32 %v419_v32, %v1152_v50  ;;  %v533_v35 = vadd.f32 %v532_v33, %v1154_v51  ;;  %v421_v36 = vpop.f32.mrb[22].mxu0  ;;  %v534_v37 = vpop.f32.mrb[22].mxu1 }
 0x157   :  { %v422_v38 = vadd.f32 %v421_v36, %v1148_v48  ;;  %v535_v39 = vadd.f32 %v534_v37, %v1150_v49  ;;  %v423_v40 = vpop.f32.mrb[23].mxu0  ;;  %v536_v41 = vpop.f32.mrb[23].mxu1 }
 0x158   :  { %v893_v42 = vpack.c.bf16 %v420_v34, %v418_v30  ;;  %v894_v43 = vpack.c.bf16 %v533_v35, %v531_v31  ;;  %v424_v44 = vadd.f32 %v423_v40, %v1152_v50  ;;  %v537_v45 = vadd.f32 %v536_v41, %v1154_v51 }
 0x15a   :  { %771 = vst [vmem:[#allocation8 + $0xa0] sm:$0xff] %v893_v42  ;;  %772 = vst [vmem:[#allocation8 + $0xa8] sm:$0xff] %v894_v43  ;;  %v895_v46 = vpack.c.bf16 %v424_v44, %v422_v38  ;;  %v896_v47 = vpack.c.bf16 %v537_v45, %v535_v39 }
 0x15c   :  { %773 = vst [vmem:[#allocation8 + $0xb0] sm:$0xff] %v895_v46  ;;  %774 = vst [vmem:[#allocation8 + $0xb8] sm:$0xff] %v896_v47  ;;  %v427_v52 = vpop.f32.mrb[24].mxu0  ;;  %v540_v53 = vpop.f32.mrb[24].mxu1 }
 0x15d   :  { %v428_v54 = vadd.f32 %v427_v52, %v1148_v48  ;;  %v541_v55 = vadd.f32 %v540_v53, %v1150_v49  ;;  %v429_v56 = vpop.f32.mrb[25].mxu0  ;;  %v542_v57 = vpop.f32.mrb[25].mxu1 }
 0x15e   :  { %v430_v58 = vadd.f32 %v429_v56, %v1152_v50  ;;  %v543_v59 = vadd.f32 %v542_v57, %v1154_v51  ;;  %v431_v60 = vpop.f32.mrb[26].mxu0  ;;  %v544_v61 = vpop.f32.mrb[26].mxu1 }
 0x15f   :  { %v432_v62 = vadd.f32 %v431_v60, %v1148_v48  ;;  %v545_v63 = vadd.f32 %v544_v61, %v1150_v49  ;;  %v433_v0 = vpop.f32.mrb[27].mxu0  ;;  %v546_v1 = vpop.f32.mrb[27].mxu1 }
 0x160   :  { %v897_v2 = vpack.c.bf16 %v430_v58, %v428_v54  ;;  %v898_v3 = vpack.c.bf16 %v543_v59, %v541_v55  ;;  %v434_v4 = vadd.f32 %v433_v0, %v1152_v50  ;;  %v547_v5 = vadd.f32 %v546_v1, %v1154_v51 }
 0x162   :  { %775 = vst [vmem:[#allocation8 + $0xc0] sm:$0xff] %v897_v2  ;;  %776 = vst [vmem:[#allocation8 + $0xc8] sm:$0xff] %v898_v3  ;;  %v899_v6 = vpack.c.bf16 %v434_v4, %v432_v62  ;;  %v900_v7 = vpack.c.bf16 %v547_v5, %v545_v63 }
 0x164   :  { %777 = vst [vmem:[#allocation8 + $0xd0] sm:$0xff] %v899_v6  ;;  %778 = vst [vmem:[#allocation8 + $0xd8] sm:$0xff] %v900_v7  ;;  %v437_v8 = vpop.f32.mrb[28].mxu0  ;;  %v550_v9 = vpop.f32.mrb[28].mxu1 }
 0x165   :  { %v438_v10 = vadd.f32 %v437_v8, %v1148_v48  ;;  %v551_v11 = vadd.f32 %v550_v9, %v1150_v49  ;;  %v439_v12 = vpop.f32.mrb[29].mxu0  ;;  %v552_v13 = vpop.f32.mrb[29].mxu1 }
 0x166   :  { %v440_v14 = vadd.f32 %v439_v12, %v1152_v50  ;;  %v553_v15 = vadd.f32 %v552_v13, %v1154_v51  ;;  %v441_v16 = vpop.f32.mrb[30].mxu0  ;;  %v554_v17 = vpop.f32.mrb[30].mxu1 }
 0x167   :  { %v442_v18 = vadd.f32 %v441_v16, %v1148_v48  ;;  %v555_v19 = vadd.f32 %v554_v17, %v1150_v49  ;;  %v443_v20 = vpop.f32.mrb[31].mxu0  ;;  %v556_v21 = vpop.f32.mrb[31].mxu1 }
 0x168   :  { %v901_v22 = vpack.c.bf16 %v440_v14, %v438_v10  ;;  %v902_v23 = vpack.c.bf16 %v553_v15, %v551_v11  ;;  %v444_v24 = vadd.f32 %v443_v20, %v1152_v50  ;;  %v557_v25 = vadd.f32 %v556_v21, %v1154_v51 }
 0x16a   :  { %779 = vst [vmem:[#allocation8 + $0xe0] sm:$0xff] %v901_v22  ;;  %780 = vst [vmem:[#allocation8 + $0xe8] sm:$0xff] %v902_v23  ;;  %v903_v26 = vpack.c.bf16 %v444_v24, %v442_v18  ;;  %v904_v27 = vpack.c.bf16 %v557_v25, %v555_v19 }
 0x16c   :  { %781 = vst [vmem:[#allocation8 + $0xf0] sm:$0xff] %v903_v26  ;;  %782 = vst [vmem:[#allocation8 + $0xf8] sm:$0xff] %v904_v27 }
 0x16d   :  { %1047 = shalt.err (!%p1044_p0)
}
 0x16e   :  { %s1048_s29 = scalar_lea.hbm %s1238_s3, 4096 }
 0x16f   :  { %p1049_p1 = scmp.ne.s32.totalorder %s1238_s3, %s1048_s29  ;;  %p1052_p2 = scmp.lt.u32.totalorder %s1048_s29, %s1238_s3 }
 0x171   :  { %p1054_p3 = pnand %p1052_p2, %p1049_p1 }
 0x173   :  { %1057 = shalt.err (!%p1054_p3)
}
 0x174   :  { %794 = dma.vmem_to_hbm [thread:$0]  %s789_s25, 4096, %s1238_s3, [#allocation4], %s1065_s22, %s1065_s22, %s1066_s23  }
 0x175   :  { %1062 = dma.done.wait [#allocation4], 4096  }
 0x176   :  { %1063 = vsyncadd [#allocation4], 4294963200 }
 0x177   :  { %798 = vsyncpa [#allocation3], 1 }
 0x178   :  { %799 = vsyncpa [#allocation6], 1 }
 0x179   :  { %800 = vsyncpa [#allocation4], 1 }

</bundles_post_ra>
